<compile_context>
chip_gen: v6e
topology: v6e:2x2x1
jax: 0.10.0
libtpu: 0.0.40
codegen_flags: <defaults>
</compile_context>

<pallas_src>
import functools

import jax
import jax.numpy as jnp
from jax.experimental import pallas as pl
from jax.experimental.pallas import tpu as pltpu

_LANE = 128


def _round_up(n, m):
    return ((n + m - 1) // m) * m


def _fused_fc_kernel(x_ref, mem_ref, wx_ref, wm_ref, b_ref, out_ref):
    """Fused 'concat + Linear' hot path, concat-free.

    torch.cat((x, mem[:B]), 1) @ W  ==  x @ W[:input_size] + mem[:B] @ W[input_size:]
    so the lane-axis concat (which would lower to XLU lane-rotates + VPU
    selects and materialize a (B, K) tile before the MXU push) is replaced by
    two MXU pushes against the pre-split weight halves plus one VPU add. Both
    weight halves are whole VMEM-resident refs (no in-kernel slicing needed).
    """
    acc = jnp.dot(x_ref[...], wx_ref[...], preferred_element_type=jnp.float32)
    acc = acc + jnp.dot(mem_ref[...], wm_ref[...],
                        preferred_element_type=jnp.float32)
    acc = acc + b_ref[...]                        # (1, out_pad) broadcast (VPU)
    out_ref[...] = acc.astype(out_ref.dtype)


@functools.partial(jax.jit, static_argnames=("out_size",))
def fused_forward(x, memory_state, w_x_pad, w_m_pad, b_pad, out_size):
    """x: (B, input_size); memory_state: (memory_size, F_mem);
    w_x_pad: (input_size, out_pad); w_m_pad: (F_mem, out_pad);
    b_pad: (1, out_pad). Returns (B, out_size).

    jit fuses the mem_state[:B] slice, the pallas_call, and the trailing
    lane-unpad slice into one executable / one dispatch.
    """
    batch = x.shape[0]
    # Only the first `batch` rows of memory are ever read; slice them here
    # (static under jit) so only (batch, F_mem) is DMA'd into VMEM — this is
    # also the safeguard for large memory buffers vs v7x's 64 MiB VMEM.
    mem_rows = memory_state[:batch]
    k_dim = w_x_pad.shape[0] + w_m_pad.shape[0]
    out_pad = w_x_pad.shape[1]

    flops = 2 * batch * k_dim * out_pad
    bytes_accessed = 4 * (x.size + mem_rows.size + w_x_pad.size
                          + w_m_pad.size + b_pad.size + batch * out_pad)

    # No grid: the whole working set is a few KB, so skip the software
    # pipeline (double-buffer DMA bookkeeping, ~0.35 us/step) and map every
    # operand as one VMEM-resident block.
    # TODO(synk): if batch / dims are scaled up, reintroduce a batch grid with
    # dimension_semantics=("parallel",...) (v7x dual-TC sharding) and re-budget
    # per-block VMEM (inputs double-buffered) against v7x's 64 MiB physical /
    # 32 MiB default scoped limit rather than v6e's 128 MiB.
    y_pad = pl.pallas_call(
        _fused_fc_kernel,
        out_shape=jax.ShapeDtypeStruct((batch, out_pad), x.dtype),
        in_specs=[pl.BlockSpec(memory_space=pltpu.MemorySpace.VMEM)
                  for _ in range(5)],
        out_specs=pl.BlockSpec(memory_space=pltpu.MemorySpace.VMEM),
        cost_estimate=pl.CostEstimate(flops=flops, transcendentals=0,
                                      bytes_accessed=bytes_accessed),
    )(x, mem_rows, w_x_pad, w_m_pad, b_pad)
    # Drop the lane padding back to the logical output width (fused under jit).
    return y_pad[:, :out_size]


class MyModelPallas:
    """JAX/Pallas port of the PyTorch MyModel.

    The undocumented `Memory` module is modeled as a deterministic buffer of
    shape (memory_size, memory_feature); `write()` is a no-op state refresh.
    """
    # TODO(synk): `Memory` class is not defined in the reference; its write()
    # semantics are unknown, so it is modeled as a static deterministic buffer.

    def __init__(self, input_size, out_size, memory_size, memory_feature,
                 key=jax.random.PRNGKey(0)):
        self.input_size = input_size
        self.out_size = out_size
        self.memory_size = memory_size
        self.memory_feature = memory_feature

        k_mem, k_w, k_b = jax.random.split(key, 3)
        # Deterministic memory state.
        self.memory_state = jax.random.normal(
            k_mem, (memory_size, memory_feature), dtype=jnp.float32)

        # nn.Linear(in=input_size+memory_feature, out=out_size):
        # PyTorch stores weight as (out, in); keep it transposed (in, out).
        in_features = input_size + memory_feature
        bound = 1.0 / (in_features ** 0.5)
        self.w_full = jax.random.uniform(
            k_w, (in_features, out_size), minval=-bound, maxval=bound,
            dtype=jnp.float32)
        self.bias = jax.random.uniform(
            k_b, (out_size,), minval=-bound, maxval=bound, dtype=jnp.float32)

        # Zero-pad the output dimension to a full lane width (128) once at
        # init so the kernel's store is unmasked/lane-dense, and pre-split the
        # weight into the x-rows and memory-rows so the kernel never has to
        # concatenate operands along the lane axis. Result columns
        # [out_size:out_pad] are exact zeros and get sliced off in the wrapper.
        # (bf16 operand cast would further help the MXU, but f32 is kept for
        #  bit-faithful parity with the reference Linear.)
        self.out_pad = _round_up(max(out_size, 1), _LANE)
        w_pad = jnp.zeros((in_features, self.out_pad), dtype=jnp.float32)
        w_pad = w_pad.at[:, :out_size].set(self.w_full)
        self.w_x_pad = w_pad[:input_size]            # (input_size, out_pad)
        self.w_m_pad = w_pad[input_size:]            # (memory_feature, out_pad)
        self.b_pad = jnp.zeros((1, self.out_pad), dtype=jnp.float32)
        self.b_pad = self.b_pad.at[:, :out_size].set(self.bias)

    def memory_write(self):
        # No-op (see TODO above): memory content is deterministic.
        return None

    def memory_read(self):
        return self.memory_state

    def __call__(self, x):
        self.memory_write()
        batch_size = x.shape[0]
        if batch_size > self.memory_size:
            raise ValueError(
                f"batch_size ({batch_size}) must be <= memory_size "
                f"({self.memory_size}) for mem_state[:batch_size] to be valid.")
        mem_state = self.memory_read()                 # (memory_size, F_mem)
        y = fused_forward(x, mem_state, self.w_x_pad, self.w_m_pad,
                          self.b_pad, self.out_size)
        return y, mem_state


if __name__ == "__main__":
    key = jax.random.PRNGKey(0)
    k_model, k_x = jax.random.split(key)

    batch = 8
    input_size = 32
    out_size = 16
    memory_size = 8          # memory_size >= batch, as the slice requires
    memory_feature = 16

    model = MyModelPallas(input_size, out_size, memory_size, memory_feature,
                          key=k_model)
    x = jax.random.normal(k_x, (batch, input_size), dtype=jnp.float32)

    y, mem_state = model(x)
    jax.block_until_ready(y)
    jax.block_until_ready(mem_state)

    # Sanity check against a plain-JAX reference of the same math
    # (concat + Linear with the unpadded weight/bias).
    ref = (jnp.concatenate([x, mem_state[:batch]], axis=1) @ model.w_full
           + model.bias)
    assert y.shape == (batch, out_size)
    assert mem_state.shape == (memory_size, memory_feature)
    assert jnp.allclose(y, ref, atol=1e-5, rtol=1e-5)

    print("KERNEL_OK")
</pallas_src>

<mosaic_0001>
module attributes {stable_mosaic.version = 11 : i64} {
  func.func @_fused_fc_kernel(%arg0: memref<8x32xf32, #tpu.memory_space<vmem>>, %arg1: memref<8x16xf32, #tpu.memory_space<vmem>>, %arg2: memref<32x128xf32, #tpu.memory_space<vmem>>, %arg3: memref<16x128xf32, #tpu.memory_space<vmem>>, %arg4: memref<1x128xf32, #tpu.memory_space<vmem>>, %arg5: memref<8x128xf32, #tpu.memory_space<vmem>>) attributes {dimension_semantics = [], scalar_prefetch = 0 : i64, scratch_operands = 0 : i64, tpu.core_type = #tpu.core_type<tc>} {
    %c0 = arith.constant 0 : index
    %c0_0 = arith.constant 0 : index
    %0 = vector.load %arg0[%c0, %c0_0] : memref<8x32xf32, #tpu.memory_space<vmem>>, vector<8x32xf32>
    %c0_1 = arith.constant 0 : index
    %c0_2 = arith.constant 0 : index
    %1 = vector.load %arg2[%c0_1, %c0_2] : memref<32x128xf32, #tpu.memory_space<vmem>>, vector<32x128xf32>
    %cst = arith.constant dense<0.000000e+00> : vector<8x128xf32>
    %2 = tpu.matmul %0, %1, %cst {dimension_numbers = #tpu.dot_dimension_numbers<[1], [0], [0], [1], [0, 0, 1, 1], [], []>} : vector<8x32xf32>, vector<32x128xf32>, vector<8x128xf32> -> vector<8x128xf32>
    %c0_3 = arith.constant 0 : index
    %c0_4 = arith.constant 0 : index
    %3 = vector.load %arg1[%c0_3, %c0_4] : memref<8x16xf32, #tpu.memory_space<vmem>>, vector<8x16xf32>
    %c0_5 = arith.constant 0 : index
    %c0_6 = arith.constant 0 : index
    %4 = vector.load %arg3[%c0_5, %c0_6] : memref<16x128xf32, #tpu.memory_space<vmem>>, vector<16x128xf32>
    %cst_7 = arith.constant dense<0.000000e+00> : vector<8x128xf32>
    %5 = tpu.matmul %3, %4, %cst_7 {dimension_numbers = #tpu.dot_dimension_numbers<[1], [0], [0], [1], [0, 0, 1, 1], [], []>} : vector<8x16xf32>, vector<16x128xf32>, vector<8x128xf32> -> vector<8x128xf32>
    %6 = arith.addf %2, %5 : vector<8x128xf32>
    %c0_8 = arith.constant 0 : index
    %c0_9 = arith.constant 0 : index
    %7 = vector.load %arg4[%c0_8, %c0_9] : memref<1x128xf32, #tpu.memory_space<vmem>>, vector<1x128xf32>
    %8 = vector.broadcast %7 : vector<1x128xf32> to vector<8x128xf32>
    %9 = arith.addf %6, %8 : vector<8x128xf32>
    %c0_10 = arith.constant 0 : index
    %c0_11 = arith.constant 0 : index
    %10 = vector.load %arg5[%c0_10, %c0_11] : memref<8x128xf32, #tpu.memory_space<vmem>>, vector<8x128xf32>
    tpu.vector_store %arg5[%c0_10, %c0_11], %9 {strides = array<i32>} : memref<8x128xf32, #tpu.memory_space<vmem>>, vector<8x128xf32>,
    return
  }
}

</mosaic_0001>

<bundles_post_ra>
// kernel: fused_forward.1
= control target key start
LH: loop header
LB: loop body
LE: loop exit
PB: predicated region body
PF: predicated region fallthrough
CT: control target
= control target key end

     0   :  { %10 = vsyncpa [#allocation3], 0  ;;  %s457_s0 = inlined_call_operand.hbm [shape: f32[8,32], index: 0, kind: input, shape index: {}]   ;;  %s458_s1 = inlined_call_operand.hbm [shape: f32[8,16], index: 1, kind: input, shape index: {}]   ;;  %s459_s2 = inlined_call_operand.hbm [shape: f32[32,128], index: 2, kind: input, shape index: {}]   ;;  %s460_s3 = inlined_call_operand.hbm [shape: f32[16,128], index: 3, kind: input, shape index: {}]   ;;  %s461_s4 = inlined_call_operand.vmem [shape: f32[1,128], index: 4, kind: input, shape index: {}]   ;;  %s462_s5 = inlined_call_operand.hbm [shape: f32[8,128], index: 5, kind: output, shape index: {}]  }
   0x1   :  { %11 = vsyncpa [#allocation6], 0 }
   0x2   :  { %12 = vsyncpa [#allocation9], 0 }
   0x3   :  { %13 = vsyncpa [#allocation4], 0  ;;  %s400_s18 = smov [#allocation5]   ;;  %s401_s20 = smov [#allocation2]  }
   0x4   :  { %s30_s19 = sshll.u32 %s400_s18, 4  ;;  %s20_s21 = sshll.u32 %s401_s20, 4  ;;  %s31_s19 = int_to_ptr.vmem [resolvable:$true] %s30_s19  ;;  %s21_s21 = int_to_ptr.vmem [resolvable:$true] %s20_s21 }
   0x5   :  { %s300_s22 = scalar_lea.vmem %s31_s19, 128  ;;  %p305_p1 = scmp.lt.s32.totalorder %s31_s19, %s31_s19 }
   0x6   :  { %p301_p0 = scmp.ne.s32.totalorder %s31_s19, %s300_s22  ;;  %p306_p2 = scmp.lt.s32.totalorder %s300_s22, %s300_s22 }
   0x8   :  { %p307_p3 = por %p306_p2, %p305_p1 }
   0xa   :  { %p308_p4 = pnand %p307_p3, %p301_p0 }
   0xc   :  { %311 = shalt.err (!%p308_p4)
}
   0xd   :  { %33 = dma.hbm_to_vmem [thread:$0]  %s458_s1, 128, %s31_s19, [#allocation6]  }
   0xe   :  { %s320_s25 = scalar_lea.vmem %s21_s21, 128  ;;  %p325_p6 = scmp.lt.s32.totalorder %s21_s21, %s21_s21 }
   0xf   :  { %p321_p5 = scmp.ne.s32.totalorder %s21_s21, %s320_s25  ;;  %p326_p7 = scmp.lt.s32.totalorder %s320_s25, %s320_s25 }
  0x11   :  { %p327_p8 = por %p326_p7, %p325_p6 }
  0x13   :  { %p328_p9 = pnand %p327_p8, %p321_p5 }
  0x15   :  { %331 = shalt.err (!%p328_p9)
}
  0x16   :  { %23 = dma.hbm_to_vmem [thread:$0]  %s457_s0, 128, %s21_s21, [#allocation3]  }
  0x17   :  { %s402_s28 = smov [#allocation7]  }
  0x18   :  { %s39_s29 = sshll.u32 %s402_s28, 4  ;;  %s40_s29 = int_to_ptr.vmem [resolvable:$true] %s39_s29 }
  0x19   :  { %s340_s30 = scalar_lea.vmem %s40_s29, 512  ;;  %p345_p11 = scmp.lt.s32.totalorder %s40_s29, %s40_s29 }
  0x1a   :  { %p341_p10 = scmp.ne.s32.totalorder %s40_s29, %s340_s30  ;;  %p346_p12 = scmp.lt.s32.totalorder %s340_s30, %s340_s30 }
  0x1c   :  { %p347_p13 = por %p346_p12, %p345_p11 }
  0x1e   :  { %p348_p0 = pnand %p347_p13, %p341_p10 }
  0x20   :  { %351 = shalt.err (!%p348_p0)
}
  0x21   :  { %s403_s1 = smov 128   ;;  %s404_s6 = smov 8  }
  0x22   :  { %45 = dma.hbm_to_vmem [thread:$0]  %s459_s2, 512, %s40_s29, [#allocation6], %s403_s1, %s403_s1, %s404_s6  }
  0x23   :  { %s405_s9 = smov [#allocation8]  }
  0x24   :  { %s51_s10 = sshll.u32 %s405_s9, 4  ;;  %s52_s10 = int_to_ptr.vmem [resolvable:$true] %s51_s10 }
  0x25   :  { %s360_s0 = scalar_lea.vmem %s52_s10, 256  ;;  %p365_p2 = scmp.lt.s32.totalorder %s52_s10, %s52_s10 }
  0x26   :  { %p361_p1 = scmp.ne.s32.totalorder %s52_s10, %s360_s0  ;;  %p366_p3 = scmp.lt.s32.totalorder %s360_s0, %s360_s0 }
  0x28   :  { %p367_p4 = por %p366_p3, %p365_p2 }
  0x2a   :  { %p368_p5 = pnand %p367_p4, %p361_p1 }
  0x2c   :  { %371 = shalt.err (!%p368_p5)
}
  0x2d   :  { %57 = dma.hbm_to_vmem [thread:$0]  %s460_s3, 256, %s52_s10, [#allocation9], %s403_s1, %s403_s1, %s404_s6  }
  0x2e   :  { %392 = dma.done.wait [#allocation3], 128  }
  0x2f   :  { %393 = vsyncadd [#allocation3], 4294967168 }
  0x30   :  { %394 = dma.done.wait [#allocation6], 640  }
  0x31   :  { %395 = vsyncadd [#allocation6], 4294966656 }
  0x32   :  { %396 = dma.done.wait [#allocation9], 256  }
  0x33   :  { %397 = vsyncadd [#allocation9], 4294967040  ;;  %v406_v0 = vmov 0.0   ;;  %vm407_vm0 = vmmov 0   ;;  %v76_v1 = vld [vmem:[#allocation7 + $0x18] sm:$0xff]  ;;  %v79_v2 = vld [vmem:[#allocation8 + $0x8] sm:$0xff] }
  0x34   :  { %272 = vmatprep.subr.mxu1 %v406_v0  ;;  %265 = vmatprep.subr.mxu0 %v406_v0  ;;  %v75_v3 = vld [vmem:[#allocation7 + $0x10] sm:$0xff]  ;;  %v78_v4 = vld [vmem:[#allocation8] sm:$0xff]  ;;  %v77_v5 = vld [vmem:[#allocation5] sm:$0xff]  ;;  %vm80_vm1 = vcmask 130048   ;;  %vm154_vm2 = vcmask 261120   ;;  %s408_s13 = smov [#allocation10]  }
  0x35   :  { %269 = vmatprep.mubr.msk.f32.mxu0 %vm407_vm0, %v406_v0  ;;  %280 = vmatprep.mubr.msk.f32.mxu1 %vm407_vm0, %v406_v0  ;;  %v74_v6 = vld [vmem:[#allocation7 + $0x8] sm:$0xff]  ;;  %v73_v7 = vld [vmem:[#allocation7] sm:$0xff]  ;;  %v72_v8 = vld [vmem:[#allocation2] sm:$0xff]  ;;  %s243_s14 = sshll.u32 %s408_s13, 4  ;;  %s244_s14 = int_to_ptr.vmem [resolvable:$true] %s243_s14 }
  0x36   :  { %273 = vmatpush3.msra.mxu1 %v76_v1  ;;  %266 = vmatpush3.msra.mxu0 %v79_v2  ;;  %v256_v12 = vld [vmem:[%s461_s4] ss:$0 sm:$0xff]  ;;  %s372_s15 = scalar_lea.vmem %s244_s14, 128  ;;  %p377_p7 = scmp.lt.s32.totalorder %s244_s14, %s244_s14 }
  0x37   :  { %274 = vmatprep.subr.mxu1 %v406_v0  ;;  %267 = vmatprep.subr.mxu0 %v406_v0  ;;  %p373_p6 = scmp.ne.s32.totalorder %s244_s14, %s372_s15  ;;  %p378_p8 = scmp.lt.s32.totalorder %s372_s15, %s372_s15 }
  0x38   :  { %275 = vmatpush3.msra.mxu1 %v75_v3  ;;  %268 = vmatpush3.msra.mxu0 %v78_v4 }
  0x39   :  { %276 = vmatprep.subr.mxu1 %v406_v0  ;;  %270 = vmatmul.mubr.msk.f32.vlgmr.msra.gmra.mxu0 %vm80_vm1, %v77_v5  ;;  %p379_p9 = por %p378_p8, %p377_p7 }
  0x3a   :  { %277 = vmatpush3.msra.mxu1 %v74_v6 }
  0x3b   :  { %278 = vmatprep.subr.mxu1 %v406_v0  ;;  %p380_p10 = pnand %p379_p9, %p373_p6 }
  0x3c   :  { %279 = vmatpush3.msra.mxu1 %v73_v7 }
  0x3d   :  { %281 = vmatmul.mubr.msk.f32.vlgmr.msra.gmra.mxu1 %vm154_vm2, %v72_v8 }
  0xf9   :  { %v150_v9 = vpop.f32.mrf.mxu0 }
  0xfb   :  { %v271_v10 = vpop.f32.mrf.mxu0 }
  0xfd   :  { %v224_v11 = vpop.f32.mrf.mxu1 }
  0xfe   :  { %v225_v13 = vadd.f32 %v224_v11, %v150_v9 }
  0xff   :  { %v282_v14 = vpop.f32.mrf.mxu1 }
 0x100   :  { %v235_v15 = vadd.f32 %v256_v12, %v225_v13 }
 0x102   :  { %236 = vst [vmem:[#allocation10] sm:$0xff] %v235_v15 }
 0x103   :  { %383 = shalt.err (!%p380_p10)
}
 0x104   :  { %246 = dma.vmem_to_hbm [thread:$0]  %s244_s14, 128, %s462_s5, [#allocation4]  }
 0x105   :  { %398 = dma.done.wait [#allocation4], 128  }
 0x106   :  { %399 = vsyncadd [#allocation4], 4294967168 }
 0x107   :  { %250 = vsyncpa [#allocation3], 1 }
 0x108   :  { %251 = vsyncpa [#allocation6], 1 }
 0x109   :  { %252 = vsyncpa [#allocation9], 1 }
 0x10a   :  { %253 = vsyncpa [#allocation4], 1 }

</bundles_post_ra>
